<compile_context>
chip_gen: v7x
topology: tpu7x:2x2x1
jax: 0.10.0
libtpu: 0.0.40
codegen_flags: <defaults>
</compile_context>

<pallas_src>
import jax
import jax.numpy as jnp
from jax.experimental import pallas as pl
from jax.experimental.pallas import tpu as pltpu

_LANE = 128      # lane width (last dim)
_SUBLANE = 8     # sublane width (second-to-last dim)


def _round_up(n, m):
    return ((n + m - 1) // m) * m


def _make_fused_mlp_kernel(num_hidden):
    """Fused kernel: `num_hidden` x (matmul+bias+relu) then matmul+bias+log_softmax.

    Ref order: x_ref, (w_ref, b_ref) * (num_hidden + 1), o_ref.
    x / W are bf16, biases f32, accumulation f32.  All feature dims are
    pre-padded to multiples of 128 by the wrapper; the padded output-layer
    bias lanes carry -1e30 so no in-kernel masking is required.
    """

    def kernel(*refs):
        x_ref = refs[0]
        o_ref = refs[-1]
        wb_refs = refs[1:-1]

        h = x_ref[...]                                   # bf16 activations
        for li in range(num_hidden):
            w_ref = wb_refs[2 * li]
            b_ref = wb_refs[2 * li + 1]
            acc = jnp.dot(h, w_ref[...], preferred_element_type=jnp.float32)
            acc = jnp.maximum(acc + b_ref[...], 0.0)     # bias + ReLU in f32
            h = acc.astype(jnp.bfloat16)                 # dropout = identity (eval)

        w_ref = wb_refs[2 * num_hidden]
        b_ref = wb_refs[2 * num_hidden + 1]
        logits = jnp.dot(h, w_ref[...], preferred_element_type=jnp.float32)
        logits = logits + b_ref[...]                     # padded lanes become -1e30

        m = jnp.max(logits, axis=1, keepdims=True)
        z = logits - m
        lse = jnp.log(jnp.sum(jnp.exp(z), axis=1, keepdims=True))
        o_ref[...] = (z - lse).astype(o_ref.dtype)

    return kernel


def init_classifier_params(key, input_size, output_size, hidden_layers):
    """Deterministic parameter init. Weights stored as [in, out] (transposed vs PyTorch)."""
    sizes = [input_size] + list(hidden_layers)
    params = []
    for h_in, h_out in zip(sizes[:-1], sizes[1:]):
        key, kw, kb = jax.random.split(key, 3)
        bound = 1.0 / jnp.sqrt(h_in)
        w = jax.random.uniform(kw, (h_in, h_out), jnp.float32, -bound, bound)
        b = jax.random.uniform(kb, (1, h_out), jnp.float32, -bound, bound)
        params.append((w, b))
    key, kw, kb = jax.random.split(key, 3)
    bound = 1.0 / jnp.sqrt(hidden_layers[-1])
    w_out = jax.random.uniform(kw, (hidden_layers[-1], output_size), jnp.float32, -bound, bound)
    b_out = jax.random.uniform(kb, (1, output_size), jnp.float32, -bound, bound)
    return params, (w_out, b_out)


def prepare_classifier_params(hidden_params, output_params):
    """One-time (out of the hot path) padding + bf16 cast of all layer params.

    Weights -> bf16, zero-padded to lane multiples of 128 on both dims.
    Biases  -> f32, padded with 0 (hidden) or -1e30 (output layer) so padded
    logit lanes vanish under log_softmax without any in-kernel masking.
    """
    all_params = list(hidden_params) + [output_params]
    num_layers = len(all_params)
    input_size = all_params[0][0].shape[0]
    output_size = all_params[-1][0].shape[1]

    padded = []
    in_dim_p = _round_up(input_size, _LANE)
    for li, (w, b) in enumerate(all_params):
        k_in, n = w.shape
        n_p = _round_up(n, _LANE)
        w_p = w.astype(jnp.float32)
        if in_dim_p != k_in or n_p != n:
            w_p = jnp.pad(w_p, ((0, in_dim_p - k_in), (0, n_p - n)))
        w_p = w_p.astype(jnp.bfloat16)

        b_p = b.reshape(1, -1).astype(jnp.float32)
        if n_p != n:
            pad_val = -1e30 if li == num_layers - 1 else 0.0
            b_p = jnp.pad(b_p, ((0, 0), (0, n_p - n)), constant_values=pad_val)
        padded.append((w_p, b_p))
        in_dim_p = n_p

    meta = dict(
        input_size=input_size,
        input_size_p=_round_up(input_size, _LANE),
        output_size=output_size,
        output_size_p=padded[-1][0].shape[1],
        num_hidden=len(hidden_params),
    )
    return padded, meta


def classifier_forward(x_nchw, prepared):
    """Matches Classifier.forward (eval mode: dropout = identity)."""
    padded, meta = prepared
    B = x_nchw.shape[0]
    x = x_nchw.reshape(B, -1)                     # x.view(B, -1)
    K = x.shape[1]
    assert K == meta["input_size"], (K, meta["input_size"])

    Kp = meta["input_size_p"]
    n_out = meta["output_size"]
    n_out_p = meta["output_size_p"]
    num_hidden = meta["num_hidden"]

    # ---- batch padding / tiling (sublane multiple of 8, tile capped at 128 rows)
    Bp = _round_up(B, _SUBLANE)
    tile_b = min(128, Bp)
    Bp = _round_up(Bp, tile_b)

    x_p = x.astype(jnp.bfloat16)
    if Bp != B or Kp != K:
        x_p = jnp.pad(x_p, ((0, Bp - B), (0, Kp - K)))

    flat_params = []
    for w_p, b_p in padded:
        flat_params += [w_p, b_p]

    # ---- cost estimate (bf16 weights/activations, f32 biases/output; exp + log)
    flops = 0
    param_bytes = 0
    for w_p, b_p in padded:
        flops += 2 * Bp * w_p.shape[0] * w_p.shape[1]
        param_bytes += w_p.size * 2 + b_p.size * 4
    bytes_accessed = x_p.size * 2 + Bp * n_out_p * 4 + param_bytes
    cost = pl.CostEstimate(flops=flops,
                           transcendentals=Bp * n_out_p + Bp,
                           bytes_accessed=bytes_accessed)

    # ---- explicit VMEM budget: resident params (single-buffered) + 2x activation
    #      tile + 2x output tile, with headroom; capped at the v7x 64 MiB per-TC size.
    vmem_need = param_bytes + 2 * tile_b * Kp * 2 + 2 * tile_b * n_out_p * 4
    vmem_limit = min(max(int(vmem_need * 1.3), 32 * 1024 * 1024), 64 * 1024 * 1024)

    kernel = _make_fused_mlp_kernel(num_hidden)

    def build_specs(single_buffer_weights):
        specs = [pl.BlockSpec((tile_b, Kp), lambda i: (i, 0))]
        for w_p, b_p in padded:
            if single_buffer_weights:
                # Grid-invariant blocks: single-buffer to halve resident VMEM.
                specs.append(pl.BlockSpec(w_p.shape, lambda i: (0, 0),
                                          pipeline_mode=pl.Buffered(1)))
                specs.append(pl.BlockSpec(b_p.shape, lambda i: (0, 0),
                                          pipeline_mode=pl.Buffered(1)))
            else:
                specs.append(pl.BlockSpec(w_p.shape, lambda i: (0, 0)))
                specs.append(pl.BlockSpec(b_p.shape, lambda i: (0, 0)))
        return specs

    def run(in_specs):
        return pl.pallas_call(
            kernel,
            out_shape=jax.ShapeDtypeStruct((Bp, n_out_p), jnp.float32),
            grid=(Bp // tile_b,),
            in_specs=in_specs,
            out_specs=pl.BlockSpec((tile_b, n_out_p), lambda i: (i, 0)),
            compiler_params=pltpu.CompilerParams(
                dimension_semantics=("parallel",),
                vmem_limit_bytes=vmem_limit),
            cost_estimate=cost,
        )(x_p, *flat_params)

    try:
        out_p = run(build_specs(single_buffer_weights=True))
        out_p = jax.block_until_ready(out_p)
    except Exception:
        # Fallback if this JAX build rejects pipeline_mode on top-level BlockSpecs.
        out_p = run(build_specs(single_buffer_weights=False))

    if Bp != B or n_out_p != n_out:
        out_p = out_p[:B, :n_out]
    return out_p


def _reference_forward(x_nchw, hidden_params, output_params, use_bf16):
    """Pure-JAX reference; use_bf16=True mirrors the kernel's compute dtypes."""
    B = x_nchw.shape[0]
    cdt = jnp.bfloat16 if use_bf16 else jnp.float32
    h = x_nchw.reshape(B, -1).astype(jnp.float32).astype(cdt)
    for w, b in hidden_params:
        a = jnp.dot(h, w.astype(cdt), preferred_element_type=jnp.float32) + b
        h = jnp.maximum(a, 0.0).astype(cdt)
    w_out, b_out = output_params
    y = jnp.dot(h, w_out.astype(cdt), preferred_element_type=jnp.float32) + b_out
    return jax.nn.log_softmax(y, axis=1)


if __name__ == "__main__":
    key = jax.random.PRNGKey(0)

    # Small shapes consistent with the module: flatten a [B, C, H, W] image.
    B, C, H, W = 2, 4, 16, 16
    input_size = C * H * W          # 1024
    hidden_layers = [64, 32]
    output_size = 10

    key, kx, kp = jax.random.split(key, 3)
    x = jax.random.normal(kx, (B, C, H, W), jnp.float32)

    hidden_params, output_params = init_classifier_params(
        kp, input_size, output_size, hidden_layers)

    # One-time parameter preparation (padding + bf16 cast) outside the hot path.
    prepared = prepare_classifier_params(hidden_params, output_params)

    out = classifier_forward(x, prepared)
    out = jax.block_until_ready(out)

    ref_bf16 = _reference_forward(x, hidden_params, output_params, use_bf16=True)
    ref_f32 = _reference_forward(x, hidden_params, output_params, use_bf16=False)

    assert out.shape == (B, output_size), out.shape
    # Tight check vs dtype-matched reference; loose check vs full-f32 semantics.
    assert jnp.allclose(out, ref_bf16, atol=2e-3, rtol=2e-3), "mismatch vs bf16-matched reference"
    assert jnp.allclose(out, ref_f32, atol=5e-2, rtol=5e-2), "mismatch vs f32 reference"
    # log_softmax rows sum to 1 in prob space
    assert jnp.allclose(jnp.sum(jnp.exp(out), axis=1), 1.0, atol=1e-5)

    print("KERNEL_OK")
</pallas_src>

<mosaic_0001>
module attributes {stable_mosaic.version = 11 : i64} {
  func.func @kernel(%arg0: i32, %arg1: memref<8x1024xbf16, #tpu.memory_space<vmem>>, %arg2: memref<1024x128xbf16, #tpu.memory_space<vmem>>, %arg3: memref<1x128xf32, #tpu.memory_space<vmem>>, %arg4: memref<128x128xbf16, #tpu.memory_space<vmem>>, %arg5: memref<1x128xf32, #tpu.memory_space<vmem>>, %arg6: memref<128x128xbf16, #tpu.memory_space<vmem>>, %arg7: memref<1x128xf32, #tpu.memory_space<vmem>>, %arg8: memref<8x128xf32, #tpu.memory_space<vmem>>) attributes {dimension_semantics = [#tpu.dimension_semantics<parallel>], iteration_bounds = array<i64: 1>, scalar_prefetch = 0 : i64, scratch_operands = 0 : i64, tpu.core_type = #tpu.core_type<tc>, window_params = [{transform_indices = @transform_0, window_bounds = array<i64: 8, 1024>}, {pipeline_mode = #tpu.pipeline_mode<synchronous>, transform_indices = @transform_1, window_bounds = array<i64: 1024, 128>}, {pipeline_mode = #tpu.pipeline_mode<synchronous>, transform_indices = @transform_2, window_bounds = array<i64: 1, 128>}, {pipeline_mode = #tpu.pipeline_mode<synchronous>, transform_indices = @transform_3, window_bounds = array<i64: 128, 128>}, {pipeline_mode = #tpu.pipeline_mode<synchronous>, transform_indices = @transform_4, window_bounds = array<i64: 1, 128>}, {pipeline_mode = #tpu.pipeline_mode<synchronous>, transform_indices = @transform_5, window_bounds = array<i64: 128, 128>}, {pipeline_mode = #tpu.pipeline_mode<synchronous>, transform_indices = @transform_6, window_bounds = array<i64: 1, 128>}, {transform_indices = @transform_7, window_bounds = array<i64: 8, 128>}]} {
    %c0 = arith.constant 0 : index
    %c0_0 = arith.constant 0 : index
    %0 = vector.load %arg1[%c0, %c0_0] : memref<8x1024xbf16, #tpu.memory_space<vmem>>, vector<8x1024xbf16>
    %c0_1 = arith.constant 0 : index
    %c0_2 = arith.constant 0 : index
    %1 = vector.load %arg2[%c0_1, %c0_2] : memref<1024x128xbf16, #tpu.memory_space<vmem>>, vector<1024x128xbf16>
    %cst = arith.constant dense<0.000000e+00> : vector<8x128xf32>
    %2 = tpu.matmul %0, %1, %cst {dimension_numbers = #tpu.dot_dimension_numbers<[1], [0], [0], [1], [0, 0, 1, 1], [], []>} : vector<8x1024xbf16>, vector<1024x128xbf16>, vector<8x128xf32> -> vector<8x128xf32>
    %c0_3 = arith.constant 0 : index
    %c0_4 = arith.constant 0 : index
    %3 = vector.load %arg3[%c0_3, %c0_4] : memref<1x128xf32, #tpu.memory_space<vmem>>, vector<1x128xf32>
    %4 = vector.broadcast %3 : vector<1x128xf32> to vector<8x128xf32>
    %5 = arith.addf %2, %4 : vector<8x128xf32>
    %cst_5 = arith.constant 0.000000e+00 : f32
    %6 = vector.broadcast %cst_5 : f32 to vector<8x128xf32>
    %7 = arith.maximumf %5, %6 : vector<8x128xf32>
    %8 = arith.truncf %7 : vector<8x128xf32> to vector<8x128xbf16>
    %c0_6 = arith.constant 0 : index
    %c0_7 = arith.constant 0 : index
    %9 = vector.load %arg4[%c0_6, %c0_7] : memref<128x128xbf16, #tpu.memory_space<vmem>>, vector<128x128xbf16>
    %cst_8 = arith.constant dense<0.000000e+00> : vector<8x128xf32>
    %10 = tpu.matmul %8, %9, %cst_8 {dimension_numbers = #tpu.dot_dimension_numbers<[1], [0], [0], [1], [0, 0, 1, 1], [], []>} : vector<8x128xbf16>, vector<128x128xbf16>, vector<8x128xf32> -> vector<8x128xf32>
    %c0_9 = arith.constant 0 : index
    %c0_10 = arith.constant 0 : index
    %11 = vector.load %arg5[%c0_9, %c0_10] : memref<1x128xf32, #tpu.memory_space<vmem>>, vector<1x128xf32>
    %12 = vector.broadcast %11 : vector<1x128xf32> to vector<8x128xf32>
    %13 = arith.addf %10, %12 : vector<8x128xf32>
    %cst_11 = arith.constant 0.000000e+00 : f32
    %14 = vector.broadcast %cst_11 : f32 to vector<8x128xf32>
    %15 = arith.maximumf %13, %14 : vector<8x128xf32>
    %16 = arith.truncf %15 : vector<8x128xf32> to vector<8x128xbf16>
    %c0_12 = arith.constant 0 : index
    %c0_13 = arith.constant 0 : index
    %17 = vector.load %arg6[%c0_12, %c0_13] : memref<128x128xbf16, #tpu.memory_space<vmem>>, vector<128x128xbf16>
    %cst_14 = arith.constant dense<0.000000e+00> : vector<8x128xf32>
    %18 = tpu.matmul %16, %17, %cst_14 {dimension_numbers = #tpu.dot_dimension_numbers<[1], [0], [0], [1], [0, 0, 1, 1], [], []>} : vector<8x128xbf16>, vector<128x128xbf16>, vector<8x128xf32> -> vector<8x128xf32>
    %c0_15 = arith.constant 0 : index
    %c0_16 = arith.constant 0 : index
    %19 = vector.load %arg7[%c0_15, %c0_16] : memref<1x128xf32, #tpu.memory_space<vmem>>, vector<1x128xf32>
    %20 = vector.broadcast %19 : vector<1x128xf32> to vector<8x128xf32>
    %21 = arith.addf %18, %20 : vector<8x128xf32>
    %cst_17 = arith.constant dense<0xFF800000> : vector<8xf32>
    %22 = vector.multi_reduction <maximumf>, %21, %cst_17 [1] : vector<8x128xf32> to vector<8xf32>
    %23 = vector.shape_cast %22 : vector<8xf32> to vector<8x1xf32>
    %24 = vector.broadcast %23 : vector<8x1xf32> to vector<8x128xf32>
    %25 = arith.subf %21, %24 : vector<8x128xf32>
    %26 = math.exp %25 : vector<8x128xf32>
    %cst_18 = arith.constant dense<0.000000e+00> : vector<8xf32>
    %27 = vector.multi_reduction <add>, %26, %cst_18 [1] : vector<8x128xf32> to vector<8xf32>
    %28 = vector.shape_cast %27 : vector<8xf32> to vector<8x1xf32>
    %29 = math.log %28 : vector<8x1xf32>
    %30 = vector.broadcast %29 : vector<8x1xf32> to vector<8x128xf32>
    %31 = arith.subf %25, %30 : vector<8x128xf32>
    %c0_19 = arith.constant 0 : index
    %c0_20 = arith.constant 0 : index
    %32 = vector.load %arg8[%c0_19, %c0_20] : memref<8x128xf32, #tpu.memory_space<vmem>>, vector<8x128xf32>
    tpu.vector_store %arg8[%c0_19, %c0_20], %31 {strides = array<i32>} : memref<8x128xf32, #tpu.memory_space<vmem>>, vector<8x128xf32>,
    return
  }
  func.func @transform_0(%arg0: i32) -> (i32, i32) {
    %c0_i32 = arith.constant 0 : i32
    %c0_i32_0 = arith.constant 0 : i32
    return %arg0, %c0_i32 : i32, i32
  }
  func.func @transform_1(%arg0: i32) -> (i32, i32) {
    %c0_i32 = arith.constant 0 : i32
    %c0_i32_0 = arith.constant 0 : i32
    %c0_i32_1 = arith.constant 0 : i32
    return %c0_i32, %c0_i32_0 : i32, i32
  }
  func.func @transform_2(%arg0: i32) -> (i32, i32) {
    %c0_i32 = arith.constant 0 : i32
    %c0_i32_0 = arith.constant 0 : i32
    %c0_i32_1 = arith.constant 0 : i32
    return %c0_i32, %c0_i32_0 : i32, i32
  }
  func.func @transform_3(%arg0: i32) -> (i32, i32) {
    %c0_i32 = arith.constant 0 : i32
    %c0_i32_0 = arith.constant 0 : i32
    %c0_i32_1 = arith.constant 0 : i32
    return %c0_i32, %c0_i32_0 : i32, i32
  }
  func.func @transform_4(%arg0: i32) -> (i32, i32) {
    %c0_i32 = arith.constant 0 : i32
    %c0_i32_0 = arith.constant 0 : i32
    %c0_i32_1 = arith.constant 0 : i32
    return %c0_i32, %c0_i32_0 : i32, i32
  }
  func.func @transform_5(%arg0: i32) -> (i32, i32) {
    %c0_i32 = arith.constant 0 : i32
    %c0_i32_0 = arith.constant 0 : i32
    %c0_i32_1 = arith.constant 0 : i32
    return %c0_i32, %c0_i32_0 : i32, i32
  }
  func.func @transform_6(%arg0: i32) -> (i32, i32) {
    %c0_i32 = arith.constant 0 : i32
    %c0_i32_0 = arith.constant 0 : i32
    %c0_i32_1 = arith.constant 0 : i32
    return %c0_i32, %c0_i32_0 : i32, i32
  }
  func.func @transform_7(%arg0: i32) -> (i32, i32) {
    %c0_i32 = arith.constant 0 : i32
    %c0_i32_0 = arith.constant 0 : i32
    return %arg0, %c0_i32 : i32, i32
  }
}

module attributes {stable_mosaic.version = 11 : i64} {
  func.func @kernel(%arg0: i32, %arg1: memref<8x1024xbf16, #tpu.memory_space<vmem>>, %arg2: memref<1024x128xbf16, #tpu.memory_space<vmem>>, %arg3: memref<1x128xf32, #tpu.memory_space<vmem>>, %arg4: memref<128x128xbf16, #tpu.memory_space<vmem>>, %arg5: memref<1x128xf32, #tpu.memory_space<vmem>>, %arg6: memref<128x128xbf16, #tpu.memory_space<vmem>>, %arg7: memref<1x128xf32, #tpu.memory_space<vmem>>, %arg8: memref<8x128xf32, #tpu.memory_space<vmem>>) attributes {dimension_semantics = [#tpu.dimension_semantics<parallel>], iteration_bounds = array<i64: 1>, scalar_prefetch = 0 : i64, scratch_operands = 0 : i64, tpu.core_type = #tpu.core_type<tc>, window_params = [{transform_indices = @transform_0, window_bounds = array<i64: 8, 1024>}, {pipeline_mode = #tpu.pipeline_mode<synchronous>, transform_indices = @transform_1, window_bounds = array<i64: 1024, 128>}, {pipeline_mode = #tpu.pipeline_mode<synchronous>, transform_indices = @transform_2, window_bounds = array<i64: 1, 128>}, {pipeline_mode = #tpu.pipeline_mode<synchronous>, transform_indices = @transform_3, window_bounds = array<i64: 128, 128>}, {pipeline_mode = #tpu.pipeline_mode<synchronous>, transform_indices = @transform_4, window_bounds = array<i64: 1, 128>}, {pipeline_mode = #tpu.pipeline_mode<synchronous>, transform_indices = @transform_5, window_bounds = array<i64: 128, 128>}, {pipeline_mode = #tpu.pipeline_mode<synchronous>, transform_indices = @transform_6, window_bounds = array<i64: 1, 128>}, {transform_indices = @transform_7, window_bounds = array<i64: 8, 128>}]} {
    %c0 = arith.constant 0 : index
    %c0_0 = arith.constant 0 : index
    %0 = vector.load %arg1[%c0, %c0_0] : memref<8x1024xbf16, #tpu.memory_space<vmem>>, vector<8x1024xbf16>
    %c0_1 = arith.constant 0 : index
    %c0_2 = arith.constant 0 : index
    %1 = vector.load %arg2[%c0_1, %c0_2] : memref<1024x128xbf16, #tpu.memory_space<vmem>>, vector<1024x128xbf16>
    %cst = arith.constant dense<0.000000e+00> : vector<8x128xf32>
    %2 = tpu.matmul %0, %1, %cst {dimension_numbers = #tpu.dot_dimension_numbers<[1], [0], [0], [1], [0, 0, 1, 1], [], []>} : vector<8x1024xbf16>, vector<1024x128xbf16>, vector<8x128xf32> -> vector<8x128xf32>
    %c0_3 = arith.constant 0 : index
    %c0_4 = arith.constant 0 : index
    %3 = vector.load %arg3[%c0_3, %c0_4] : memref<1x128xf32, #tpu.memory_space<vmem>>, vector<1x128xf32>
    %4 = vector.broadcast %3 : vector<1x128xf32> to vector<8x128xf32>
    %5 = arith.addf %2, %4 : vector<8x128xf32>
    %cst_5 = arith.constant 0.000000e+00 : f32
    %6 = vector.broadcast %cst_5 : f32 to vector<8x128xf32>
    %7 = arith.maximumf %5, %6 : vector<8x128xf32>
    %8 = arith.truncf %7 : vector<8x128xf32> to vector<8x128xbf16>
    %c0_6 = arith.constant 0 : index
    %c0_7 = arith.constant 0 : index
    %9 = vector.load %arg4[%c0_6, %c0_7] : memref<128x128xbf16, #tpu.memory_space<vmem>>, vector<128x128xbf16>
    %cst_8 = arith.constant dense<0.000000e+00> : vector<8x128xf32>
    %10 = tpu.matmul %8, %9, %cst_8 {dimension_numbers = #tpu.dot_dimension_numbers<[1], [0], [0], [1], [0, 0, 1, 1], [], []>} : vector<8x128xbf16>, vector<128x128xbf16>, vector<8x128xf32> -> vector<8x128xf32>
    %c0_9 = arith.constant 0 : index
    %c0_10 = arith.constant 0 : index
    %11 = vector.load %arg5[%c0_9, %c0_10] : memref<1x128xf32, #tpu.memory_space<vmem>>, vector<1x128xf32>
    %12 = vector.broadcast %11 : vector<1x128xf32> to vector<8x128xf32>
    %13 = arith.addf %10, %12 : vector<8x128xf32>
    %cst_11 = arith.constant 0.000000e+00 : f32
    %14 = vector.broadcast %cst_11 : f32 to vector<8x128xf32>
    %15 = arith.maximumf %13, %14 : vector<8x128xf32>
    %16 = arith.truncf %15 : vector<8x128xf32> to vector<8x128xbf16>
    %c0_12 = arith.constant 0 : index
    %c0_13 = arith.constant 0 : index
    %17 = vector.load %arg6[%c0_12, %c0_13] : memref<128x128xbf16, #tpu.memory_space<vmem>>, vector<128x128xbf16>
    %cst_14 = arith.constant dense<0.000000e+00> : vector<8x128xf32>
    %18 = tpu.matmul %16, %17, %cst_14 {dimension_numbers = #tpu.dot_dimension_numbers<[1], [0], [0], [1], [0, 0, 1, 1], [], []>} : vector<8x128xbf16>, vector<128x128xbf16>, vector<8x128xf32> -> vector<8x128xf32>
    %c0_15 = arith.constant 0 : index
    %c0_16 = arith.constant 0 : index
    %19 = vector.load %arg7[%c0_15, %c0_16] : memref<1x128xf32, #tpu.memory_space<vmem>>, vector<1x128xf32>
    %20 = vector.broadcast %19 : vector<1x128xf32> to vector<8x128xf32>
    %21 = arith.addf %18, %20 : vector<8x128xf32>
    %cst_17 = arith.constant dense<0xFF800000> : vector<8xf32>
    %22 = vector.multi_reduction <maximumf>, %21, %cst_17 [1] : vector<8x128xf32> to vector<8xf32>
    %23 = vector.shape_cast %22 : vector<8xf32> to vector<8x1xf32>
    %24 = vector.broadcast %23 : vector<8x1xf32> to vector<8x128xf32>
    %25 = arith.subf %21, %24 : vector<8x128xf32>
    %26 = math.exp %25 : vector<8x128xf32>
    %cst_18 = arith.constant dense<0.000000e+00> : vector<8xf32>
    %27 = vector.multi_reduction <add>, %26, %cst_18 [1] : vector<8x128xf32> to vector<8xf32>
    %28 = vector.shape_cast %27 : vector<8xf32> to vector<8x1xf32>
    %29 = math.log %28 : vector<8x1xf32>
    %30 = vector.broadcast %29 : vector<8x1xf32> to vector<8x128xf32>
    %31 = arith.subf %25, %30 : vector<8x128xf32>
    %c0_19 = arith.constant 0 : index
    %c0_20 = arith.constant 0 : index
    %32 = vector.load %arg8[%c0_19, %c0_20] : memref<8x128xf32, #tpu.memory_space<vmem>>, vector<8x128xf32>
    tpu.vector_store %arg8[%c0_19, %c0_20], %31 {strides = array<i32>} : memref<8x128xf32, #tpu.memory_space<vmem>>, vector<8x128xf32>,
    return
  }
  func.func @transform_0(%arg0: i32) -> (i32, i32) {
    %c0_i32 = arith.constant 0 : i32
    %c0_i32_0 = arith.constant 0 : i32
    return %arg0, %c0_i32 : i32, i32
  }
  func.func @transform_1(%arg0: i32) -> (i32, i32) {
    %c0_i32 = arith.constant 0 : i32
    %c0_i32_0 = arith.constant 0 : i32
    %c0_i32_1 = arith.constant 0 : i32
    return %c0_i32, %c0_i32_0 : i32, i32
  }
  func.func @transform_2(%arg0: i32) -> (i32, i32) {
    %c0_i32 = arith.constant 0 : i32
    %c0_i32_0 = arith.constant 0 : i32
    %c0_i32_1 = arith.constant 0 : i32
    return %c0_i32, %c0_i32_0 : i32, i32
  }
  func.func @transform_3(%arg0: i32) -> (i32, i32) {
    %c0_i32 = arith.constant 0 : i32
    %c0_i32_0 = arith.constant 0 : i32
    %c0_i32_1 = arith.constant 0 : i32
    return %c0_i32, %c0_i32_0 : i32, i32
  }
  func.func @transform_4(%arg0: i32) -> (i32, i32) {
    %c0_i32 = arith.constant 0 : i32
    %c0_i32_0 = arith.constant 0 : i32
    %c0_i32_1 = arith.constant 0 : i32
    return %c0_i32, %c0_i32_0 : i32, i32
  }
  func.func @transform_5(%arg0: i32) -> (i32, i32) {
    %c0_i32 = arith.constant 0 : i32
    %c0_i32_0 = arith.constant 0 : i32
    %c0_i32_1 = arith.constant 0 : i32
    return %c0_i32, %c0_i32_0 : i32, i32
  }
  func.func @transform_6(%arg0: i32) -> (i32, i32) {
    %c0_i32 = arith.constant 0 : i32
    %c0_i32_0 = arith.constant 0 : i32
    %c0_i32_1 = arith.constant 0 : i32
    return %c0_i32, %c0_i32_0 : i32, i32
  }
  func.func @transform_7(%arg0: i32) -> (i32, i32) {
    %c0_i32 = arith.constant 0 : i32
    %c0_i32_0 = arith.constant 0 : i32
    return %arg0, %c0_i32 : i32, i32
  }
}

</mosaic_0001>

<bundles_post_ra>
// kernel: tpu_custom_call.1
= control target key start
LH: loop header
LB: loop body
LE: loop exit
PB: predicated region body
PF: predicated region fallthrough
CT: control target
= control target key end

     0   :  { %12 = vsyncpa [#allocation3], 0  ;;  %s1647_s0 = inlined_call_operand.hbm [shape: bf16[8,1024], index: 0, kind: input, shape index: {}]   ;;  %s1648_s1 = inlined_call_operand.hbm [shape: bf16[1024,128], index: 1, kind: input, shape index: {}]   ;;  %s1649_s2 = inlined_call_operand.vmem [shape: f32[1,128], index: 2, kind: input, shape index: {}]   ;;  %s1650_s3 = inlined_call_operand.hbm [shape: bf16[128,128], index: 3, kind: input, shape index: {}]   ;;  %s1651_s4 = inlined_call_operand.vmem [shape: f32[1,128], index: 4, kind: input, shape index: {}]   ;;  %s1652_s5 = inlined_call_operand.hbm [shape: bf16[128,128], index: 5, kind: input, shape index: {}]   ;;  %s1653_s6 = inlined_call_operand.vmem [shape: f32[1,128], index: 6, kind: input, shape index: {}]   ;;  %s1654_s7 = inlined_call_operand.hbm [shape: f32[8,128], index: 7, kind: output, shape index: {}]  }
   0x1   :  { %13 = vsyncpa [#allocation6], 0 }
   0x2   :  { %14 = vsyncpa [#allocation9], 0 }
   0x3   :  { %15 = vsyncpa [#allocation4], 0  ;;  %s1502_s24 = smov [#allocation5]   ;;  %s1384_s28 = scalar_lea.hbm %s1648_s1, 8192 }
   0x4   :  { %s31_s25 = sshll.u32 %s1502_s24, 4  ;;  %p1385_p0 = scmp.ne.s32.totalorder %s1648_s1, %s1384_s28  ;;  %s32_s25 = int_to_ptr.vmem [resolvable:$true] %s31_s25 }
   0x5   :  { %p1388_p1 = scmp.lt.u32.totalorder %s1384_s28, %s1648_s1 }
   0x7   :  { %p1390_p2 = pnand %p1388_p1, %p1385_p0 }
   0x9   :  { %1393 = shalt.err (!%p1390_p2)
}
   0xa   :  { %s1394_s10 = scalar_lea.vmem %s32_s25, 8192  ;;  %p1399_p4 = scmp.lt.s32.totalorder %s32_s25, %s32_s25 }
   0xb   :  { %p1395_p3 = scmp.ne.s32.totalorder %s32_s25, %s1394_s10  ;;  %p1400_p5 = scmp.lt.s32.totalorder %s1394_s10, %s1394_s10 }
   0xd   :  { %p1401_p6 = por %p1400_p5, %p1399_p4 }
   0xf   :  { %p1402_p7 = pnand %p1401_p6, %p1395_p3 }
  0x11   :  { %1405 = shalt.err (!%p1402_p7)
}
  0x12   :  { %s1503_s11 = smov 64   ;;  %s1504_s12 = smov 4  }
  0x13   :  { %37 = dma.hbm_to_vmem [thread:$0]  %s1648_s1, 8192, %s32_s25, [#allocation6], %s1503_s11, %s1503_s11, %s1504_s12  }
  0x14   :  { %s1505_s15 = smov [#allocation2]   ;;  %s1506_s17 = smov [#allocation7]  }
  0x15   :  { %s22_s16 = sshll.u32 %s1505_s15, 4  ;;  %s45_s18 = sshll.u32 %s1506_s17, 4  ;;  %s23_s16 = int_to_ptr.vmem [resolvable:$true] %s22_s16  ;;  %s46_s18 = int_to_ptr.vmem [resolvable:$true] %s45_s18 }
  0x16   :  { %s1406_s21 = scalar_lea.hbm %s1647_s0, 512 }
  0x17   :  { %p1407_p8 = scmp.ne.s32.totalorder %s1647_s0, %s1406_s21  ;;  %p1410_p9 = scmp.lt.u32.totalorder %s1406_s21, %s1647_s0 }
  0x19   :  { %p1412_p10 = pnand %p1410_p9, %p1407_p8 }
  0x1b   :  { %1415 = shalt.err (!%p1412_p10)
}
  0x1c   :  { %s1416_s1 = scalar_lea.vmem %s23_s16, 512  ;;  %p1421_p12 = scmp.lt.s32.totalorder %s23_s16, %s23_s16 }
  0x1d   :  { %p1417_p11 = scmp.ne.s32.totalorder %s23_s16, %s1416_s1  ;;  %p1422_p13 = scmp.lt.s32.totalorder %s1416_s1, %s1416_s1 }
  0x1f   :  { %p1423_p0 = por %p1422_p13, %p1421_p12 }
  0x21   :  { %p1424_p1 = pnand %p1423_p0, %p1417_p11 }
  0x23   :  { %1427 = shalt.err (!%p1424_p1)
}
  0x24   :  { %25 = dma.hbm_to_vmem [thread:$0]  %s1647_s0, 512, %s23_s16, [#allocation3]  }
  0x25   :  { %s1428_s30 = scalar_lea.hbm %s1650_s3, 1024 }
  0x26   :  { %p1429_p2 = scmp.ne.s32.totalorder %s1650_s3, %s1428_s30  ;;  %p1432_p3 = scmp.lt.u32.totalorder %s1428_s30, %s1650_s3 }
  0x28   :  { %p1434_p4 = pnand %p1432_p3, %p1429_p2 }
  0x2a   :  { %1437 = shalt.err (!%p1434_p4)
}
  0x2b   :  { %s1438_s14 = scalar_lea.vmem %s46_s18, 1024  ;;  %p1443_p6 = scmp.lt.s32.totalorder %s46_s18, %s46_s18 }
  0x2c   :  { %p1439_p5 = scmp.ne.s32.totalorder %s46_s18, %s1438_s14  ;;  %p1444_p7 = scmp.lt.s32.totalorder %s1438_s14, %s1438_s14 }
  0x2e   :  { %p1445_p8 = por %p1444_p7, %p1443_p6 }
  0x30   :  { %p1446_p9 = pnand %p1445_p8, %p1439_p5 }
  0x32   :  { %1449 = shalt.err (!%p1446_p9)
}
  0x33   :  { %51 = dma.hbm_to_vmem [thread:$0]  %s1650_s3, 1024, %s46_s18, [#allocation6], %s1503_s11, %s1503_s11, %s1504_s12  }
  0x34   :  { %s1507_s16 = smov [#allocation8]   ;;  %s1450_s21 = scalar_lea.hbm %s1652_s5, 1024 }
  0x35   :  { %s59_s17 = sshll.u32 %s1507_s16, 4  ;;  %p1451_p10 = scmp.ne.s32.totalorder %s1652_s5, %s1450_s21  ;;  %s60_s17 = int_to_ptr.vmem [resolvable:$true] %s59_s17 }
  0x36   :  { %p1454_p11 = scmp.lt.u32.totalorder %s1450_s21, %s1652_s5 }
  0x38   :  { %p1456_p12 = pnand %p1454_p11, %p1451_p10 }
  0x3a   :  { %1459 = shalt.err (!%p1456_p12)
}
  0x3b   :  { %s1460_s1 = scalar_lea.vmem %s60_s17, 1024  ;;  %p1465_p0 = scmp.lt.s32.totalorder %s60_s17, %s60_s17 }
  0x3c   :  { %p1461_p13 = scmp.ne.s32.totalorder %s60_s17, %s1460_s1  ;;  %p1466_p1 = scmp.lt.s32.totalorder %s1460_s1, %s1460_s1 }
  0x3e   :  { %p1467_p2 = por %p1466_p1, %p1465_p0 }
  0x40   :  { %p1468_p3 = pnand %p1467_p2, %p1461_p13 }
  0x42   :  { %1471 = shalt.err (!%p1468_p3)
}
  0x43   :  { %65 = dma.hbm_to_vmem [thread:$0]  %s1652_s5, 1024, %s60_s17, [#allocation9], %s1503_s11, %s1503_s11, %s1504_s12  }
  0x44   :  { %1494 = dma.done.wait [#allocation3], 512  }
  0x45   :  { %1495 = vsyncadd [#allocation3], 4294966784 }
  0x46   :  { %1496 = dma.done.wait [#allocation6], 9216  }
  0x47   :  { %1497 = vsyncadd [#allocation6], 4294958080 }
  0x48   :  { %1498 = dma.done.wait [#allocation9], 1024  }
  0x49   :  { %1499 = vsyncadd [#allocation9], 4294966272  ;;  %v1292_v0 = vld [vmem:[#allocation5 + $0x40] sm:$0xff]   ;;  %v1296_v4 = vld [vmem:[#allocation5 + $0x48] sm:$0xff]   ;;  %vm1509_vm0 = vmmov 0  }
  0x4a   :  { %v1293_v1 = vld [vmem:[#allocation5 + $0xc0] sm:$0xff]   ;;  %1137 = vmatprep.subr.bf16.mxu0 %v1292_v0  ;;  %v1297_v5 = vld [vmem:[#allocation5 + $0xc8] sm:$0xff]   ;;  %v1300_v8 = vld [vmem:[#allocation5 + $0x50] sm:$0xff]  }
  0x4b   :  { %v1294_v2 = vld [vmem:[#allocation5] sm:$0xff]   ;;  %1159 = vmatprep.subr.bf16.mxu1 %v1293_v1  ;;  %v1298_v6 = vld [vmem:[#allocation5 + $0x8] sm:$0xff]   ;;  %v1301_v9 = vld [vmem:[#allocation5 + $0xd0] sm:$0xff]  }
  0x4c   :  { %v1295_v3 = vld [vmem:[#allocation5 + $0x80] sm:$0xff]   ;;  %1138 = vmatpush3.bf16.msra.mxu0 %v1294_v2  ;;  %v1299_v7 = vld [vmem:[#allocation5 + $0x88] sm:$0xff]   ;;  %v1302_v10 = vld [vmem:[#allocation5 + $0x10] sm:$0xff]  }
  0x4d   :  { %1160 = vmatpush3.bf16.msra.mxu1 %v1295_v3  ;;  %1139 = vmatprep.subr.bf16.mxu0 %v1296_v4  ;;  %v1303_v11 = vld [vmem:[#allocation5 + $0x90] sm:$0xff]   ;;  %v1304_v12 = vld [vmem:[#allocation5 + $0x58] sm:$0xff]   ;;  %v1308_v16 = vld [vmem:[#allocation5 + $0x60] sm:$0xff]  }
  0x4e   :  { %1161 = vmatprep.subr.bf16.mxu1 %v1297_v5  ;;  %v1305_v13 = vld [vmem:[#allocation5 + $0xd8] sm:$0xff]   ;;  %v1309_v17 = vld [vmem:[#allocation5 + $0xe0] sm:$0xff]   ;;  %v1312_v20 = vld [vmem:[#allocation5 + $0x68] sm:$0xff]  }
  0x4f   :  { %v1306_v14 = vld [vmem:[#allocation5 + $0x18] sm:$0xff]   ;;  %v1310_v18 = vld [vmem:[#allocation5 + $0x20] sm:$0xff]   ;;  %v1313_v21 = vld [vmem:[#allocation5 + $0xe8] sm:$0xff]  }
  0x50   :  { %1140 = vmatpush3.bf16.msra.mxu0 %v1298_v6  ;;  %v1307_v15 = vld [vmem:[#allocation5 + $0x98] sm:$0xff]   ;;  %v1311_v19 = vld [vmem:[#allocation5 + $0xa0] sm:$0xff]   ;;  %v1314_v22 = vld [vmem:[#allocation5 + $0x28] sm:$0xff]  }
  0x51   :  { %1162 = vmatpush3.bf16.msra.mxu1 %v1299_v7  ;;  %1141 = vmatprep.subr.bf16.mxu0 %v1300_v8  ;;  %v1315_v23 = vld [vmem:[#allocation5 + $0xa8] sm:$0xff]   ;;  %v1316_v24 = vld [vmem:[#allocation5 + $0x70] sm:$0xff]   ;;  %v1320_v28 = vld [vmem:[#allocation5 + $0x78] sm:$0xff]  }
  0x52   :  { %1163 = vmatprep.subr.bf16.mxu1 %v1301_v9  ;;  %v1317_v25 = vld [vmem:[#allocation5 + $0xf0] sm:$0xff]   ;;  %v1321_v29 = vld [vmem:[#allocation5 + $0xf8] sm:$0xff]   ;;  %v81_v32 = vld [vmem:[#allocation2] sm:$0xff] }
  0x53   :  { %v1318_v26 = vld [vmem:[#allocation5 + $0x30] sm:$0xff]   ;;  %v1322_v30 = vld [vmem:[#allocation5 + $0x38] sm:$0xff]   ;;  %v82_v33 = vld [vmem:[#allocation2 + $0x8] sm:$0xff]  ;;  %v1047_v34 = vcombine.low %v81_v32, %v81_v32  ;;  %v1048_v35 = vcombine.high %v81_v32, %v81_v32 }
  0x54   :  { %1142 = vmatpush3.bf16.msra.mxu0 %v1302_v10  ;;  %v1319_v27 = vld [vmem:[#allocation5 + $0xb0] sm:$0xff]   ;;  %v1323_v31 = vld [vmem:[#allocation5 + $0xb8] sm:$0xff]   ;;  %v1049_v36 = vcombine.low %v82_v33, %v82_v33  ;;  %v1050_v37 = vcombine.high %v82_v33, %v82_v33  ;;  %v1328_v38 = vld [vmem:[#allocation5 + $0x140] sm:$0xff]  }
  0x55   :  { %1164 = vmatpush3.bf16.msra.mxu1 %v1303_v11  ;;  %1143 = vmatprep.subr.bf16.mxu0 %v1304_v12  ;;  %v1329_v39 = vld [vmem:[#allocation5 + $0x1c0] sm:$0xff]   ;;  %v1332_v42 = vld [vmem:[#allocation5 + $0x148] sm:$0xff]   ;;  %v1336_v46 = vld [vmem:[#allocation5 + $0x150] sm:$0xff]  }
  0x56   :  { %1165 = vmatprep.subr.bf16.mxu1 %v1305_v13  ;;  %664 = vmatprep.mubr.bf16.mxu0 %v1048_v35  ;;  %v1330_v40 = vld [vmem:[#allocation5 + $0x100] sm:$0xff]   ;;  %v1333_v43 = vld [vmem:[#allocation5 + $0x1c8] sm:$0xff]   ;;  %v1337_v47 = vld [vmem:[#allocation5 + $0x1d0] sm:$0xff]   ;;  %v1508_v13 = vmov 0.0  }
  0x57   :  { %704 = vmatprep.mubr.bf16.mxu1 %v1050_v37  ;;  %v1331_v41 = vld [vmem:[#allocation5 + $0x180] sm:$0xff]   ;;  %v1334_v44 = vld [vmem:[#allocation5 + $0x108] sm:$0xff]   ;;  %v1338_v48 = vld [vmem:[#allocation5 + $0x110] sm:$0xff]  }
  0x58   :  { %1144 = vmatpush3.bf16.msra.mxu0 %v1306_v14  ;;  %v1335_v45 = vld [vmem:[#allocation5 + $0x188] sm:$0xff]   ;;  %v1339_v49 = vld [vmem:[#allocation5 + $0x190] sm:$0xff]   ;;  %v1340_v50 = vld [vmem:[#allocation5 + $0x158] sm:$0xff]  }
  0x59   :  { %1166 = vmatpush3.bf16.msra.mxu1 %v1307_v15  ;;  %1145 = vmatprep.subr.bf16.mxu0 %v1308_v16  ;;  %v1341_v51 = vld [vmem:[#allocation5 + $0x1d8] sm:$0xff]   ;;  %v1344_v54 = vld [vmem:[#allocation5 + $0x160] sm:$0xff]   ;;  %v1348_v58 = vld [vmem:[#allocation5 + $0x168] sm:$0xff]  }
  0x5a   :  { %1167 = vmatprep.subr.bf16.mxu1 %v1309_v17  ;;  %v1342_v52 = vld [vmem:[#allocation5 + $0x118] sm:$0xff]   ;;  %v1345_v55 = vld [vmem:[#allocation5 + $0x1e0] sm:$0xff]   ;;  %v1349_v59 = vld [vmem:[#allocation5 + $0x1e8] sm:$0xff]  }
  0x5b   :  { %v1343_v53 = vld [vmem:[#allocation5 + $0x198] sm:$0xff]   ;;  %v1346_v56 = vld [vmem:[#allocation5 + $0x120] sm:$0xff]   ;;  %v1350_v60 = vld [vmem:[#allocation5 + $0x128] sm:$0xff]  }
  0x5c   :  { %1146 = vmatpush3.bf16.msra.mxu0 %v1310_v18  ;;  %v1347_v57 = vld [vmem:[#allocation5 + $0x1a0] sm:$0xff]   ;;  %v1351_v61 = vld [vmem:[#allocation5 + $0x1a8] sm:$0xff]   ;;  %v1352_v62 = vld [vmem:[#allocation5 + $0x170] sm:$0xff]  }
  0x5d   :  { %1168 = vmatpush3.bf16.msra.mxu1 %v1311_v19  ;;  %1147 = vmatprep.subr.bf16.mxu0 %v1312_v20  ;;  %v1353_v63 = vld [vmem:[#allocation5 + $0x1f0] sm:$0xff]   ;;  %v1356_v2 = vld [vmem:[#allocation5 + $0x178] sm:$0xff]   ;;  %v1364_v12 = vld [vmem:[#allocation7] sm:$0xff]  }
  0x5e   :  { %1169 = vmatprep.subr.bf16.mxu1 %v1313_v21  ;;  %v1354_v0 = vld [vmem:[#allocation5 + $0x130] sm:$0xff]   ;;  %v1357_v3 = vld [vmem:[#allocation5 + $0x1f8] sm:$0xff]   ;;  %v1365_v14 = vld [vmem:[#allocation7 + $0x8] sm:$0xff]  }
  0x5f   :  { %v1355_v1 = vld [vmem:[#allocation5 + $0x1b0] sm:$0xff]   ;;  %v1358_v4 = vld [vmem:[#allocation5 + $0x138] sm:$0xff]   ;;  %v1368_v17 = vld [vmem:[#allocation7 + $0x20] sm:$0xff]  }
  0x60   :  { %1148 = vmatpush3.bf16.msra.mxu0 %v1314_v22  ;;  %v1359_v5 = vld [vmem:[#allocation5 + $0x1b8] sm:$0xff]   ;;  %v83_v6 = vld [vmem:[#allocation2 + $0x10] sm:$0xff]  ;;  %v1369_v18 = vld [vmem:[#allocation7 + $0x28] sm:$0xff]  }
  0x61   :  { %1170 = vmatpush3.bf16.msra.mxu1 %v1315_v23  ;;  %1149 = vmatprep.subr.bf16.mxu0 %v1316_v24  ;;  %v1051_v7 = vcombine.low %v83_v6, %v83_v6  ;;  %v1052_v8 = vcombine.high %v83_v6, %v83_v6  ;;  %v84_v9 = vld [vmem:[#allocation2 + $0x18] sm:$0xff]  ;;  %v1366_v15 = vld [vmem:[#allocation7 + $0x10] sm:$0xff]   ;;  %v1372_v21 = vld [vmem:[#allocation8] sm:$0xff]  }
  0x62   :  { %1171 = vmatprep.subr.bf16.mxu1 %v1317_v25  ;;  %v1053_v10 = vcombine.low %v84_v9, %v84_v9  ;;  %v1054_v11 = vcombine.high %v84_v9, %v84_v9  ;;  %v1367_v16 = vld [vmem:[#allocation7 + $0x18] sm:$0xff]   ;;  %v1370_v19 = vld [vmem:[#allocation7 + $0x30] sm:$0xff]   ;;  %v1373_v22 = vld [vmem:[#allocation8 + $0x8] sm:$0xff]  }
  0x63   :  { %v1371_v20 = vld [vmem:[#allocation7 + $0x38] sm:$0xff]   ;;  %v1374_v23 = vld [vmem:[#allocation8 + $0x10] sm:$0xff]   ;;  %v1376_v25 = vld [vmem:[#allocation8 + $0x20] sm:$0xff]  }
  0x64   :  { %1150 = vmatpush3.bf16.msra.mxu0 %v1318_v26  ;;  %v1375_v24 = vld [vmem:[#allocation8 + $0x18] sm:$0xff]   ;;  %v1377_v26 = vld [vmem:[#allocation8 + $0x28] sm:$0xff]  }
  0x65   :  { %1172 = vmatpush3.bf16.msra.mxu1 %v1319_v27  ;;  %1151 = vmatprep.subr.bf16.mxu0 %v1320_v28 }
  0x66   :  { %1173 = vmatprep.subr.bf16.mxu1 %v1321_v29  ;;  %v1046_v29 = vld [vmem:[%s1649_s2] ss:$0 sm:$0xff] }
  0x68   :  { %1152 = vmatpush3.bf16.msra.mxu0 %v1322_v30 }
  0x69   :  { %1174 = vmatpush3.bf16.msra.mxu1 %v1323_v31  ;;  %1181 = vmatprep.subr.bf16.mxu0 %v1328_v38 }
  0x6a   :  { %1203 = vmatprep.subr.bf16.mxu1 %v1329_v39 }
  0x6b   :  { %665 = vmatmul.mubr.bf16.vlgmr.msra.gmra.mrb[0].mxu0 %v1047_v34 }
  0x6c   :  { %705 = vmatmul.mubr.bf16.vlgmr.msra.gmra.mrb[0].mxu1 %v1049_v36  ;;  %1182 = vmatpush3.bf16.msra.mxu0 %v1330_v40 }
  0x6d   :  { %1204 = vmatpush3.bf16.msra.mxu1 %v1331_v41  ;;  %1183 = vmatprep.subr.bf16.mxu0 %v1332_v42 }
  0x6e   :  { %1205 = vmatprep.subr.bf16.mxu1 %v1333_v43  ;;  %744 = vmatprep.mubr.bf16.mxu0 %v1052_v8 }
  0x6f   :  { %784 = vmatprep.mubr.bf16.mxu1 %v1054_v11 }
  0x70   :  { %1184 = vmatpush3.bf16.msra.mxu0 %v1334_v44 }
  0x71   :  { %1206 = vmatpush3.bf16.msra.mxu1 %v1335_v45  ;;  %1185 = vmatprep.subr.bf16.mxu0 %v1336_v46 }
  0x72   :  { %1207 = vmatprep.subr.bf16.mxu1 %v1337_v47 }
  0x74   :  { %1186 = vmatpush3.bf16.msra.mxu0 %v1338_v48 }
  0x75   :  { %1208 = vmatpush3.bf16.msra.mxu1 %v1339_v49  ;;  %1187 = vmatprep.subr.bf16.mxu0 %v1340_v50 }
  0x76   :  { %1209 = vmatprep.subr.bf16.mxu1 %v1341_v51 }
  0x78   :  { %1188 = vmatpush3.bf16.msra.mxu0 %v1342_v52 }
  0x79   :  { %1210 = vmatpush3.bf16.msra.mxu1 %v1343_v53  ;;  %1189 = vmatprep.subr.bf16.mxu0 %v1344_v54  ;;  %v1378_v54 = vld [vmem:[#allocation8 + $0x30] sm:$0xff]  }
  0x7a   :  { %1211 = vmatprep.subr.bf16.mxu1 %v1345_v55  ;;  %v1379_v55 = vld [vmem:[#allocation8 + $0x38] sm:$0xff]  }
  0x7c   :  { %1190 = vmatpush3.bf16.msra.mxu0 %v1346_v56  ;;  %v1119_v56 = vld [vmem:[%s1651_s4] ss:$0 sm:$0xff]  ;;  %s1510_s4 = smov [#allocation10]  }
  0x7d   :  { %1212 = vmatpush3.bf16.msra.mxu1 %v1347_v57  ;;  %1191 = vmatprep.subr.bf16.mxu0 %v1348_v58  ;;  %s1035_s28 = sshll.u32 %s1510_s4, 4  ;;  %s1036_s28 = int_to_ptr.vmem [resolvable:$true] %s1035_s28 }
  0x7e   :  { %1213 = vmatprep.subr.bf16.mxu1 %v1349_v59  ;;  %p1477_p5 = scmp.lt.s32.totalorder %s1036_s28, %s1036_s28 }
  0x80   :  { %1192 = vmatpush3.bf16.msra.mxu0 %v1350_v60 }
  0x81   :  { %1214 = vmatpush3.bf16.msra.mxu1 %v1351_v61  ;;  %1193 = vmatprep.subr.bf16.mxu0 %v1352_v62 }
  0x82   :  { %1215 = vmatprep.subr.bf16.mxu1 %v1353_v63 }
  0x84   :  { %1194 = vmatpush3.bf16.msra.mxu0 %v1354_v0  ;;  %v1128_v0 = vld [vmem:[%s1653_s6] ss:$0 sm:$0xff]  ;;  %s1472_s6 = scalar_lea.vmem %s1036_s28, 128 }
  0x85   :  { %1216 = vmatpush3.bf16.msra.mxu1 %v1355_v1  ;;  %1195 = vmatprep.subr.bf16.mxu0 %v1356_v2  ;;  %p1473_p4 = scmp.ne.s32.totalorder %s1036_s28, %s1472_s6  ;;  %p1478_p6 = scmp.lt.s32.totalorder %s1472_s6, %s1472_s6 }
  0x86   :  { %1217 = vmatprep.subr.bf16.mxu1 %v1357_v3 }
  0x87   :  { %p1479_p7 = por %p1478_p6, %p1477_p5 }
  0x88   :  { %1196 = vmatpush3.bf16.msra.mxu0 %v1358_v4 }
  0x89   :  { %1218 = vmatpush3.bf16.msra.mxu1 %v1359_v5  ;;  %1243 = vmatprep.subr.bf16.mxu0 %v1508_v13  ;;  %p1480_p8 = pnand %p1479_p7, %p1473_p4 }
  0x8a   :  { %1263 = vmatprep.subr.bf16.mxu1 %v1508_v13 }
  0x8b   :  { %745 = vmatmul.mubr.bf16.vlgmr.msra.gmra.mrb[4].mxu0 %v1051_v7 }
  0x8c   :  { %785 = vmatmul.mubr.bf16.vlgmr.msra.gmra.mrb[4].mxu1 %v1053_v10  ;;  %1244 = vmatpush3.bf16.msra.mxu0 %v1364_v12 }
  0x8d   :  { %1245 = vmatprep.subr.bf16.mxu0 %v1508_v13  ;;  %1259 = vmatprep.mubr.msk.bf16.mxu0 %vm1509_vm0, %v1508_v13 }
  0x8e   :  { %1279 = vmatprep.mubr.msk.bf16.mxu1 %vm1509_vm0, %v1508_v13  ;;  %1264 = vmatpush3.bf16.msra.mxu1 %v1372_v21 }
  0x8f   :  { %1265 = vmatprep.subr.bf16.mxu1 %v1508_v13 }
  0x90   :  { %1246 = vmatpush3.bf16.msra.mxu0 %v1365_v14 }
  0x91   :  { %1247 = vmatprep.subr.bf16.mxu0 %v1508_v13 }
  0x92   :  { %1266 = vmatpush3.bf16.msra.mxu1 %v1373_v22 }
  0x93   :  { %1267 = vmatprep.subr.bf16.mxu1 %v1508_v13 }
  0x94   :  { %1248 = vmatpush3.bf16.msra.mxu0 %v1366_v15 }
  0x95   :  { %1249 = vmatprep.subr.bf16.mxu0 %v1508_v13 }
  0x96   :  { %1268 = vmatpush3.bf16.msra.mxu1 %v1374_v23 }
  0x97   :  { %1269 = vmatprep.subr.bf16.mxu1 %v1508_v13 }
  0x98   :  { %1250 = vmatpush3.bf16.msra.mxu0 %v1367_v16 }
  0x99   :  { %1251 = vmatprep.subr.bf16.mxu0 %v1508_v13 }
  0x9a   :  { %1270 = vmatpush3.bf16.msra.mxu1 %v1375_v24 }
  0x9b   :  { %1271 = vmatprep.subr.bf16.mxu1 %v1508_v13 }
  0x9c   :  { %1252 = vmatpush3.bf16.msra.mxu0 %v1368_v17 }
  0x9d   :  { %1253 = vmatprep.subr.bf16.mxu0 %v1508_v13 }
  0x9e   :  { %1272 = vmatpush3.bf16.msra.mxu1 %v1376_v25 }
  0x9f   :  { %1273 = vmatprep.subr.bf16.mxu1 %v1508_v13 }
  0xa0   :  { %1254 = vmatpush3.bf16.msra.mxu0 %v1369_v18 }
  0xa1   :  { %1255 = vmatprep.subr.bf16.mxu0 %v1508_v13 }
  0xa2   :  { %1274 = vmatpush3.bf16.msra.mxu1 %v1377_v26 }
  0xa3   :  { %1275 = vmatprep.subr.bf16.mxu1 %v1508_v13 }
  0xa4   :  { %1256 = vmatpush3.bf16.msra.mxu0 %v1370_v19 }
  0xa5   :  { %1257 = vmatprep.subr.bf16.mxu0 %v1508_v13 }
  0xa6   :  { %1276 = vmatpush3.bf16.msra.mxu1 %v1378_v54 }
  0xa7   :  { %1277 = vmatprep.subr.bf16.mxu1 %v1508_v13 }
  0xa8   :  { %1258 = vmatpush3.bf16.msra.mxu0 %v1371_v20 }
  0xaa   :  { %1278 = vmatpush3.bf16.msra.mxu1 %v1379_v55 }
 0x13e   :  { %v1153_v27 = vpop.f32.mrb[0].mxu0 }
 0x13f   :  { %v1175_v28 = vpop.f32.mrb[0].mxu1  ;;  %v1154_v30 = vpop.f32.mrb[1].mxu0 }
 0x140   :  { %v1176_v31 = vpop.f32.mrb[1].mxu1  ;;  %v1155_v32 = vadd.f32 %v1154_v30, %v1153_v27  ;;  %v1156_v34 = vpop.f32.mrb[2].mxu0 }
 0x141   :  { %v1177_v33 = vadd.f32 %v1176_v31, %v1175_v28  ;;  %v1178_v35 = vpop.f32.mrb[2].mxu1  ;;  %v1157_v36 = vpop.f32.mrb[3].mxu0 }
 0x142   :  { %v1179_v37 = vpop.f32.mrb[3].mxu1  ;;  %v667_v38 = vadd.f32 %v1155_v32, %v1046_v29 }
 0x144   :  { %v707_v39 = vadd.f32 %v1177_v33, %v667_v38 }
 0x15e   :  { %v1197_v40 = vpop.f32.mrb[4].mxu0 }
 0x15f   :  { %v1219_v41 = vpop.f32.mrb[4].mxu1  ;;  %v1198_v42 = vpop.f32.mrb[5].mxu0 }
 0x160   :  { %v1220_v43 = vpop.f32.mrb[5].mxu1  ;;  %v1199_v44 = vadd.f32 %v1198_v42, %v1197_v40  ;;  %v1200_v46 = vpop.f32.mrb[6].mxu0 }
 0x161   :  { %v1221_v45 = vadd.f32 %v1220_v43, %v1219_v41  ;;  %v1222_v47 = vpop.f32.mrb[6].mxu1  ;;  %v1201_v48 = vpop.f32.mrb[7].mxu0 }
 0x162   :  { %v1223_v49 = vpop.f32.mrb[7].mxu1  ;;  %v747_v50 = vadd.f32 %v1199_v44, %v707_v39 }
 0x164   :  { %v787_v51 = vadd.f32 %v1221_v45, %v747_v50 }
 0x166   :  { %v792_v52 = vmax.f32 %v787_v51, 0.0 }
 0x168   :  { %v793_v53 = vpack.c.bf16 %v792_v52, %v792_v52 }
 0x16a   :  { %1260 = vmatmul.mubr.bf16.vlgmr.msra.gmra.mrb[8].mxu0 %v793_v53 }
 0x23d   :  { %v899_v57 = vpop.f32.mrb[8].mxu0 }
 0x23e   :  { %v900_v58 = vadd.f32 %v1119_v56, %v899_v57  ;;  %v1261_v59 = vpop.f32.mrb[9].mxu0 }
 0x23f   :  { %v902_v60 = vpop.f32.mrb[10].mxu0 }
 0x240   :  { %v905_v61 = vmax.f32 %v900_v58, 0.0  ;;  %v1262_v62 = vpop.f32.mrb[11].mxu0 }
 0x242   :  { %v906_v63 = vpack.c.bf16 %v905_v61, %v905_v61 }
 0x244   :  { %1280 = vmatmul.mubr.bf16.vlgmr.msra.gmra.mrb[8].mxu1 %v906_v63 }
 0x317   :  { %v1012_v1 = vpop.f32.mrb[8].mxu1 }
 0x318   :  { %v1013_v2 = vadd.f32 %v1128_v0, %v1012_v1  ;;  %v1281_v3 = vpop.f32.mrb[9].mxu1 }
 0x319   :  { %v1015_v4 = vpop.f32.mrb[10].mxu1 }
 0x31a   :  { %1018 = vmax.xlane.f32.xlu0 %v1013_v2  ;;  %v1282_v5 = vpop.f32.mrb[11].mxu1 }
 0x3a7   :  { %v1019_v6 = vpop.xlane.xlu0 %1018 }
 0x3a8   :  { %v1020_v7 = vsub.f32 %v1013_v2, %v1019_v6 }
 0x3aa   :  { %v1021_v8 = vmul.f32 1.442695, %v1020_v7 }
 0x3ac   :  { %1380 = vpow2.f32 %v1021_v8 }
 0x3b6   :  { %v1381_v9 = vpop.eup %1380 }
 0x3b7   :  { %1023 = vadd.xlane.f32.xlu0 %v1381_v9 }
 0x444   :  { %v1024_v10 = vpop.xlane.xlu0 %1023 }
 0x445   :  { %1382 = vlog2.f32 %v1024_v10 }
 0x44f   :  { %v1383_v11 = vpop.eup %1382 }
 0x450   :  { %v1026_v12 = vmul.f32 0.6931472, %v1383_v11 }
 0x452   :  { %v1027_v13 = vsub.f32 %v1020_v7, %v1026_v12 }
 0x454   :  { %1028 = vst [vmem:[#allocation10] sm:$0xff] %v1027_v13 }
 0x455   :  { %1483 = shalt.err (!%p1480_p8)
}
 0x456   :  { %s1484_s8 = scalar_lea.hbm %s1654_s7, 128 }
 0x457   :  { %p1485_p9 = scmp.ne.s32.totalorder %s1654_s7, %s1484_s8  ;;  %p1488_p10 = scmp.lt.u32.totalorder %s1484_s8, %s1654_s7 }
 0x459   :  { %p1490_p11 = pnand %p1488_p10, %p1485_p9 }
 0x45b   :  { %1493 = shalt.err (!%p1490_p11)
}
 0x45c   :  { %1038 = dma.vmem_to_hbm [thread:$0]  %s1036_s28, 128, %s1654_s7, [#allocation4]  }
 0x45d   :  { %1500 = dma.done.wait [#allocation4], 128  }
 0x45e   :  { %1501 = vsyncadd [#allocation4], 4294967168 }
 0x45f   :  { %1042 = vsyncpa [#allocation3], 1 }
 0x460   :  { %1043 = vsyncpa [#allocation6], 1 }
 0x461   :  { %1044 = vsyncpa [#allocation9], 1 }
 0x462   :  { %1045 = vsyncpa [#allocation4], 1 }

// kernel: tpu_custom_call.1
= control target key start
LH: loop header
LB: loop body
LE: loop exit
PB: predicated region body
PF: predicated region fallthrough
CT: control target
= control target key end

     0   :  { %12 = vsyncpa [#allocation3], 0  ;;  %s1647_s0 = inlined_call_operand.hbm [shape: bf16[8,1024], index: 0, kind: input, shape index: {}]   ;;  %s1648_s1 = inlined_call_operand.hbm [shape: bf16[1024,128], index: 1, kind: input, shape index: {}]   ;;  %s1649_s2 = inlined_call_operand.vmem [shape: f32[1,128], index: 2, kind: input, shape index: {}]   ;;  %s1650_s3 = inlined_call_operand.hbm [shape: bf16[128,128], index: 3, kind: input, shape index: {}]   ;;  %s1651_s4 = inlined_call_operand.vmem [shape: f32[1,128], index: 4, kind: input, shape index: {}]   ;;  %s1652_s5 = inlined_call_operand.hbm [shape: bf16[128,128], index: 5, kind: input, shape index: {}]   ;;  %s1653_s6 = inlined_call_operand.vmem [shape: f32[1,128], index: 6, kind: input, shape index: {}]   ;;  %s1654_s7 = inlined_call_operand.hbm [shape: f32[8,128], index: 7, kind: output, shape index: {}]  }
   0x1   :  { %13 = vsyncpa [#allocation6], 0 }
   0x2   :  { %14 = vsyncpa [#allocation9], 0 }
   0x3   :  { %15 = vsyncpa [#allocation4], 0  ;;  %s1502_s24 = smov [#allocation5]   ;;  %s1384_s28 = scalar_lea.hbm %s1648_s1, 8192 }
   0x4   :  { %s31_s25 = sshll.u32 %s1502_s24, 4  ;;  %p1385_p0 = scmp.ne.s32.totalorder %s1648_s1, %s1384_s28  ;;  %s32_s25 = int_to_ptr.vmem [resolvable:$true] %s31_s25 }
   0x5   :  { %p1388_p1 = scmp.lt.u32.totalorder %s1384_s28, %s1648_s1 }
   0x7   :  { %p1390_p2 = pnand %p1388_p1, %p1385_p0 }
   0x9   :  { %1393 = shalt.err (!%p1390_p2)
}
   0xa   :  { %s1394_s10 = scalar_lea.vmem %s32_s25, 8192  ;;  %p1399_p4 = scmp.lt.s32.totalorder %s32_s25, %s32_s25 }
   0xb   :  { %p1395_p3 = scmp.ne.s32.totalorder %s32_s25, %s1394_s10  ;;  %p1400_p5 = scmp.lt.s32.totalorder %s1394_s10, %s1394_s10 }
   0xd   :  { %p1401_p6 = por %p1400_p5, %p1399_p4 }
   0xf   :  { %p1402_p7 = pnand %p1401_p6, %p1395_p3 }
  0x11   :  { %1405 = shalt.err (!%p1402_p7)
}
  0x12   :  { %s1503_s11 = smov 64   ;;  %s1504_s12 = smov 4  }
  0x13   :  { %37 = dma.hbm_to_vmem [thread:$0]  %s1648_s1, 8192, %s32_s25, [#allocation6], %s1503_s11, %s1503_s11, %s1504_s12  }
  0x14   :  { %s1505_s15 = smov [#allocation2]   ;;  %s1506_s17 = smov [#allocation7]  }
  0x15   :  { %s22_s16 = sshll.u32 %s1505_s15, 4  ;;  %s45_s18 = sshll.u32 %s1506_s17, 4  ;;  %s23_s16 = int_to_ptr.vmem [resolvable:$true] %s22_s16  ;;  %s46_s18 = int_to_ptr.vmem [resolvable:$true] %s45_s18 }
  0x16   :  { %s1406_s21 = scalar_lea.hbm %s1647_s0, 512 }
  0x17   :  { %p1407_p8 = scmp.ne.s32.totalorder %s1647_s0, %s1406_s21  ;;  %p1410_p9 = scmp.lt.u32.totalorder %s1406_s21, %s1647_s0 }
  0x19   :  { %p1412_p10 = pnand %p1410_p9, %p1407_p8 }
  0x1b   :  { %1415 = shalt.err (!%p1412_p10)
}
  0x1c   :  { %s1416_s1 = scalar_lea.vmem %s23_s16, 512  ;;  %p1421_p12 = scmp.lt.s32.totalorder %s23_s16, %s23_s16 }
  0x1d   :  { %p1417_p11 = scmp.ne.s32.totalorder %s23_s16, %s1416_s1  ;;  %p1422_p13 = scmp.lt.s32.totalorder %s1416_s1, %s1416_s1 }
  0x1f   :  { %p1423_p0 = por %p1422_p13, %p1421_p12 }
  0x21   :  { %p1424_p1 = pnand %p1423_p0, %p1417_p11 }
  0x23   :  { %1427 = shalt.err (!%p1424_p1)
}
  0x24   :  { %25 = dma.hbm_to_vmem [thread:$0]  %s1647_s0, 512, %s23_s16, [#allocation3]  }
  0x25   :  { %s1428_s30 = scalar_lea.hbm %s1650_s3, 1024 }
  0x26   :  { %p1429_p2 = scmp.ne.s32.totalorder %s1650_s3, %s1428_s30  ;;  %p1432_p3 = scmp.lt.u32.totalorder %s1428_s30, %s1650_s3 }
  0x28   :  { %p1434_p4 = pnand %p1432_p3, %p1429_p2 }
  0x2a   :  { %1437 = shalt.err (!%p1434_p4)
}
  0x2b   :  { %s1438_s14 = scalar_lea.vmem %s46_s18, 1024  ;;  %p1443_p6 = scmp.lt.s32.totalorder %s46_s18, %s46_s18 }
  0x2c   :  { %p1439_p5 = scmp.ne.s32.totalorder %s46_s18, %s1438_s14  ;;  %p1444_p7 = scmp.lt.s32.totalorder %s1438_s14, %s1438_s14 }
  0x2e   :  { %p1445_p8 = por %p1444_p7, %p1443_p6 }
  0x30   :  { %p1446_p9 = pnand %p1445_p8, %p1439_p5 }
  0x32   :  { %1449 = shalt.err (!%p1446_p9)
}
  0x33   :  { %51 = dma.hbm_to_vmem [thread:$0]  %s1650_s3, 1024, %s46_s18, [#allocation6], %s1503_s11, %s1503_s11, %s1504_s12  }
  0x34   :  { %s1507_s16 = smov [#allocation8]   ;;  %s1450_s21 = scalar_lea.hbm %s1652_s5, 1024 }
  0x35   :  { %s59_s17 = sshll.u32 %s1507_s16, 4  ;;  %p1451_p10 = scmp.ne.s32.totalorder %s1652_s5, %s1450_s21  ;;  %s60_s17 = int_to_ptr.vmem [resolvable:$true] %s59_s17 }
  0x36   :  { %p1454_p11 = scmp.lt.u32.totalorder %s1450_s21, %s1652_s5 }
  0x38   :  { %p1456_p12 = pnand %p1454_p11, %p1451_p10 }
  0x3a   :  { %1459 = shalt.err (!%p1456_p12)
}
  0x3b   :  { %s1460_s1 = scalar_lea.vmem %s60_s17, 1024  ;;  %p1465_p0 = scmp.lt.s32.totalorder %s60_s17, %s60_s17 }
  0x3c   :  { %p1461_p13 = scmp.ne.s32.totalorder %s60_s17, %s1460_s1  ;;  %p1466_p1 = scmp.lt.s32.totalorder %s1460_s1, %s1460_s1 }
  0x3e   :  { %p1467_p2 = por %p1466_p1, %p1465_p0 }
  0x40   :  { %p1468_p3 = pnand %p1467_p2, %p1461_p13 }
  0x42   :  { %1471 = shalt.err (!%p1468_p3)
}
  0x43   :  { %65 = dma.hbm_to_vmem [thread:$0]  %s1652_s5, 1024, %s60_s17, [#allocation9], %s1503_s11, %s1503_s11, %s1504_s12  }
  0x44   :  { %1494 = dma.done.wait [#allocation3], 512  }
  0x45   :  { %1495 = vsyncadd [#allocation3], 4294966784 }
  0x46   :  { %1496 = dma.done.wait [#allocation6], 9216  }
  0x47   :  { %1497 = vsyncadd [#allocation6], 4294958080 }
  0x48   :  { %1498 = dma.done.wait [#allocation9], 1024  }
  0x49   :  { %1499 = vsyncadd [#allocation9], 4294966272  ;;  %v1292_v0 = vld [vmem:[#allocation5 + $0x40] sm:$0xff]   ;;  %v1296_v4 = vld [vmem:[#allocation5 + $0x48] sm:$0xff]   ;;  %vm1509_vm0 = vmmov 0  }
  0x4a   :  { %v1293_v1 = vld [vmem:[#allocation5 + $0xc0] sm:$0xff]   ;;  %1137 = vmatprep.subr.bf16.mxu0 %v1292_v0  ;;  %v1297_v5 = vld [vmem:[#allocation5 + $0xc8] sm:$0xff]   ;;  %v1300_v8 = vld [vmem:[#allocation5 + $0x50] sm:$0xff]  }
  0x4b   :  { %v1294_v2 = vld [vmem:[#allocation5] sm:$0xff]   ;;  %1159 = vmatprep.subr.bf16.mxu1 %v1293_v1  ;;  %v1298_v6 = vld [vmem:[#allocation5 + $0x8] sm:$0xff]   ;;  %v1301_v9 = vld [vmem:[#allocation5 + $0xd0] sm:$0xff]  }
  0x4c   :  { %v1295_v3 = vld [vmem:[#allocation5 + $0x80] sm:$0xff]   ;;  %1138 = vmatpush3.bf16.msra.mxu0 %v1294_v2  ;;  %v1299_v7 = vld [vmem:[#allocation5 + $0x88] sm:$0xff]   ;;  %v1302_v10 = vld [vmem:[#allocation5 + $0x10] sm:$0xff]  }
  0x4d   :  { %1160 = vmatpush3.bf16.msra.mxu1 %v1295_v3  ;;  %1139 = vmatprep.subr.bf16.mxu0 %v1296_v4  ;;  %v1303_v11 = vld [vmem:[#allocation5 + $0x90] sm:$0xff]   ;;  %v1304_v12 = vld [vmem:[#allocation5 + $0x58] sm:$0xff]   ;;  %v1308_v16 = vld [vmem:[#allocation5 + $0x60] sm:$0xff]  }
  0x4e   :  { %1161 = vmatprep.subr.bf16.mxu1 %v1297_v5  ;;  %v1305_v13 = vld [vmem:[#allocation5 + $0xd8] sm:$0xff]   ;;  %v1309_v17 = vld [vmem:[#allocation5 + $0xe0] sm:$0xff]   ;;  %v1312_v20 = vld [vmem:[#allocation5 + $0x68] sm:$0xff]  }
  0x4f   :  { %v1306_v14 = vld [vmem:[#allocation5 + $0x18] sm:$0xff]   ;;  %v1310_v18 = vld [vmem:[#allocation5 + $0x20] sm:$0xff]   ;;  %v1313_v21 = vld [vmem:[#allocation5 + $0xe8] sm:$0xff]  }
  0x50   :  { %1140 = vmatpush3.bf16.msra.mxu0 %v1298_v6  ;;  %v1307_v15 = vld [vmem:[#allocation5 + $0x98] sm:$0xff]   ;;  %v1311_v19 = vld [vmem:[#allocation5 + $0xa0] sm:$0xff]   ;;  %v1314_v22 = vld [vmem:[#allocation5 + $0x28] sm:$0xff]  }
  0x51   :  { %1162 = vmatpush3.bf16.msra.mxu1 %v1299_v7  ;;  %1141 = vmatprep.subr.bf16.mxu0 %v1300_v8  ;;  %v1315_v23 = vld [vmem:[#allocation5 + $0xa8] sm:$0xff]   ;;  %v1316_v24 = vld [vmem:[#allocation5 + $0x70] sm:$0xff]   ;;  %v1320_v28 = vld [vmem:[#allocation5 + $0x78] sm:$0xff]  }
  0x52   :  { %1163 = vmatprep.subr.bf16.mxu1 %v1301_v9  ;;  %v1317_v25 = vld [vmem:[#allocation5 + $0xf0] sm:$0xff]   ;;  %v1321_v29 = vld [vmem:[#allocation5 + $0xf8] sm:$0xff]   ;;  %v81_v32 = vld [vmem:[#allocation2] sm:$0xff] }
  0x53   :  { %v1318_v26 = vld [vmem:[#allocation5 + $0x30] sm:$0xff]   ;;  %v1322_v30 = vld [vmem:[#allocation5 + $0x38] sm:$0xff]   ;;  %v82_v33 = vld [vmem:[#allocation2 + $0x8] sm:$0xff]  ;;  %v1047_v34 = vcombine.low %v81_v32, %v81_v32  ;;  %v1048_v35 = vcombine.high %v81_v32, %v81_v32 }
  0x54   :  { %1142 = vmatpush3.bf16.msra.mxu0 %v1302_v10  ;;  %v1319_v27 = vld [vmem:[#allocation5 + $0xb0] sm:$0xff]   ;;  %v1323_v31 = vld [vmem:[#allocation5 + $0xb8] sm:$0xff]   ;;  %v1049_v36 = vcombine.low %v82_v33, %v82_v33  ;;  %v1050_v37 = vcombine.high %v82_v33, %v82_v33  ;;  %v1328_v38 = vld [vmem:[#allocation5 + $0x140] sm:$0xff]  }
  0x55   :  { %1164 = vmatpush3.bf16.msra.mxu1 %v1303_v11  ;;  %1143 = vmatprep.subr.bf16.mxu0 %v1304_v12  ;;  %v1329_v39 = vld [vmem:[#allocation5 + $0x1c0] sm:$0xff]   ;;  %v1332_v42 = vld [vmem:[#allocation5 + $0x148] sm:$0xff]   ;;  %v1336_v46 = vld [vmem:[#allocation5 + $0x150] sm:$0xff]  }
  0x56   :  { %1165 = vmatprep.subr.bf16.mxu1 %v1305_v13  ;;  %664 = vmatprep.mubr.bf16.mxu0 %v1048_v35  ;;  %v1330_v40 = vld [vmem:[#allocation5 + $0x100] sm:$0xff]   ;;  %v1333_v43 = vld [vmem:[#allocation5 + $0x1c8] sm:$0xff]   ;;  %v1337_v47 = vld [vmem:[#allocation5 + $0x1d0] sm:$0xff]   ;;  %v1508_v13 = vmov 0.0  }
  0x57   :  { %704 = vmatprep.mubr.bf16.mxu1 %v1050_v37  ;;  %v1331_v41 = vld [vmem:[#allocation5 + $0x180] sm:$0xff]   ;;  %v1334_v44 = vld [vmem:[#allocation5 + $0x108] sm:$0xff]   ;;  %v1338_v48 = vld [vmem:[#allocation5 + $0x110] sm:$0xff]  }
  0x58   :  { %1144 = vmatpush3.bf16.msra.mxu0 %v1306_v14  ;;  %v1335_v45 = vld [vmem:[#allocation5 + $0x188] sm:$0xff]   ;;  %v1339_v49 = vld [vmem:[#allocation5 + $0x190] sm:$0xff]   ;;  %v1340_v50 = vld [vmem:[#allocation5 + $0x158] sm:$0xff]  }
  0x59   :  { %1166 = vmatpush3.bf16.msra.mxu1 %v1307_v15  ;;  %1145 = vmatprep.subr.bf16.mxu0 %v1308_v16  ;;  %v1341_v51 = vld [vmem:[#allocation5 + $0x1d8] sm:$0xff]   ;;  %v1344_v54 = vld [vmem:[#allocation5 + $0x160] sm:$0xff]   ;;  %v1348_v58 = vld [vmem:[#allocation5 + $0x168] sm:$0xff]  }
  0x5a   :  { %1167 = vmatprep.subr.bf16.mxu1 %v1309_v17  ;;  %v1342_v52 = vld [vmem:[#allocation5 + $0x118] sm:$0xff]   ;;  %v1345_v55 = vld [vmem:[#allocation5 + $0x1e0] sm:$0xff]   ;;  %v1349_v59 = vld [vmem:[#allocation5 + $0x1e8] sm:$0xff]  }
  0x5b   :  { %v1343_v53 = vld [vmem:[#allocation5 + $0x198] sm:$0xff]   ;;  %v1346_v56 = vld [vmem:[#allocation5 + $0x120] sm:$0xff]   ;;  %v1350_v60 = vld [vmem:[#allocation5 + $0x128] sm:$0xff]  }
  0x5c   :  { %1146 = vmatpush3.bf16.msra.mxu0 %v1310_v18  ;;  %v1347_v57 = vld [vmem:[#allocation5 + $0x1a0] sm:$0xff]   ;;  %v1351_v61 = vld [vmem:[#allocation5 + $0x1a8] sm:$0xff]   ;;  %v1352_v62 = vld [vmem:[#allocation5 + $0x170] sm:$0xff]  }
  0x5d   :  { %1168 = vmatpush3.bf16.msra.mxu1 %v1311_v19  ;;  %1147 = vmatprep.subr.bf16.mxu0 %v1312_v20  ;;  %v1353_v63 = vld [vmem:[#allocation5 + $0x1f0] sm:$0xff]   ;;  %v1356_v2 = vld [vmem:[#allocation5 + $0x178] sm:$0xff]   ;;  %v1364_v12 = vld [vmem:[#allocation7] sm:$0xff]  }
  0x5e   :  { %1169 = vmatprep.subr.bf16.mxu1 %v1313_v21  ;;  %v1354_v0 = vld [vmem:[#allocation5 + $0x130] sm:$0xff]   ;;  %v1357_v3 = vld [vmem:[#allocation5 + $0x1f8] sm:$0xff]   ;;  %v1365_v14 = vld [vmem:[#allocation7 + $0x8] sm:$0xff]  }
  0x5f   :  { %v1355_v1 = vld [vmem:[#allocation5 + $0x1b0] sm:$0xff]   ;;  %v1358_v4 = vld [vmem:[#allocation5 + $0x138] sm:$0xff]   ;;  %v1368_v17 = vld [vmem:[#allocation7 + $0x20] sm:$0xff]  }
  0x60   :  { %1148 = vmatpush3.bf16.msra.mxu0 %v1314_v22  ;;  %v1359_v5 = vld [vmem:[#allocation5 + $0x1b8] sm:$0xff]   ;;  %v83_v6 = vld [vmem:[#allocation2 + $0x10] sm:$0xff]  ;;  %v1369_v18 = vld [vmem:[#allocation7 + $0x28] sm:$0xff]  }
  0x61   :  { %1170 = vmatpush3.bf16.msra.mxu1 %v1315_v23  ;;  %1149 = vmatprep.subr.bf16.mxu0 %v1316_v24  ;;  %v1051_v7 = vcombine.low %v83_v6, %v83_v6  ;;  %v1052_v8 = vcombine.high %v83_v6, %v83_v6  ;;  %v84_v9 = vld [vmem:[#allocation2 + $0x18] sm:$0xff]  ;;  %v1366_v15 = vld [vmem:[#allocation7 + $0x10] sm:$0xff]   ;;  %v1372_v21 = vld [vmem:[#allocation8] sm:$0xff]  }
  0x62   :  { %1171 = vmatprep.subr.bf16.mxu1 %v1317_v25  ;;  %v1053_v10 = vcombine.low %v84_v9, %v84_v9  ;;  %v1054_v11 = vcombine.high %v84_v9, %v84_v9  ;;  %v1367_v16 = vld [vmem:[#allocation7 + $0x18] sm:$0xff]   ;;  %v1370_v19 = vld [vmem:[#allocation7 + $0x30] sm:$0xff]   ;;  %v1373_v22 = vld [vmem:[#allocation8 + $0x8] sm:$0xff]  }
  0x63   :  { %v1371_v20 = vld [vmem:[#allocation7 + $0x38] sm:$0xff]   ;;  %v1374_v23 = vld [vmem:[#allocation8 + $0x10] sm:$0xff]   ;;  %v1376_v25 = vld [vmem:[#allocation8 + $0x20] sm:$0xff]  }
  0x64   :  { %1150 = vmatpush3.bf16.msra.mxu0 %v1318_v26  ;;  %v1375_v24 = vld [vmem:[#allocation8 + $0x18] sm:$0xff]   ;;  %v1377_v26 = vld [vmem:[#allocation8 + $0x28] sm:$0xff]  }
  0x65   :  { %1172 = vmatpush3.bf16.msra.mxu1 %v1319_v27  ;;  %1151 = vmatprep.subr.bf16.mxu0 %v1320_v28 }
  0x66   :  { %1173 = vmatprep.subr.bf16.mxu1 %v1321_v29  ;;  %v1046_v29 = vld [vmem:[%s1649_s2] ss:$0 sm:$0xff] }
  0x68   :  { %1152 = vmatpush3.bf16.msra.mxu0 %v1322_v30 }
  0x69   :  { %1174 = vmatpush3.bf16.msra.mxu1 %v1323_v31  ;;  %1181 = vmatprep.subr.bf16.mxu0 %v1328_v38 }
  0x6a   :  { %1203 = vmatprep.subr.bf16.mxu1 %v1329_v39 }
  0x6b   :  { %665 = vmatmul.mubr.bf16.vlgmr.msra.gmra.mrb[0].mxu0 %v1047_v34 }
  0x6c   :  { %705 = vmatmul.mubr.bf16.vlgmr.msra.gmra.mrb[0].mxu1 %v1049_v36  ;;  %1182 = vmatpush3.bf16.msra.mxu0 %v1330_v40 }
  0x6d   :  { %1204 = vmatpush3.bf16.msra.mxu1 %v1331_v41  ;;  %1183 = vmatprep.subr.bf16.mxu0 %v1332_v42 }
  0x6e   :  { %1205 = vmatprep.subr.bf16.mxu1 %v1333_v43  ;;  %744 = vmatprep.mubr.bf16.mxu0 %v1052_v8 }
  0x6f   :  { %784 = vmatprep.mubr.bf16.mxu1 %v1054_v11 }
  0x70   :  { %1184 = vmatpush3.bf16.msra.mxu0 %v1334_v44 }
  0x71   :  { %1206 = vmatpush3.bf16.msra.mxu1 %v1335_v45  ;;  %1185 = vmatprep.subr.bf16.mxu0 %v1336_v46 }
  0x72   :  { %1207 = vmatprep.subr.bf16.mxu1 %v1337_v47 }
  0x74   :  { %1186 = vmatpush3.bf16.msra.mxu0 %v1338_v48 }
  0x75   :  { %1208 = vmatpush3.bf16.msra.mxu1 %v1339_v49  ;;  %1187 = vmatprep.subr.bf16.mxu0 %v1340_v50 }
  0x76   :  { %1209 = vmatprep.subr.bf16.mxu1 %v1341_v51 }
  0x78   :  { %1188 = vmatpush3.bf16.msra.mxu0 %v1342_v52 }
  0x79   :  { %1210 = vmatpush3.bf16.msra.mxu1 %v1343_v53  ;;  %1189 = vmatprep.subr.bf16.mxu0 %v1344_v54  ;;  %v1378_v54 = vld [vmem:[#allocation8 + $0x30] sm:$0xff]  }
  0x7a   :  { %1211 = vmatprep.subr.bf16.mxu1 %v1345_v55  ;;  %v1379_v55 = vld [vmem:[#allocation8 + $0x38] sm:$0xff]  }
  0x7c   :  { %1190 = vmatpush3.bf16.msra.mxu0 %v1346_v56  ;;  %v1119_v56 = vld [vmem:[%s1651_s4] ss:$0 sm:$0xff]  ;;  %s1510_s4 = smov [#allocation10]  }
  0x7d   :  { %1212 = vmatpush3.bf16.msra.mxu1 %v1347_v57  ;;  %1191 = vmatprep.subr.bf16.mxu0 %v1348_v58  ;;  %s1035_s28 = sshll.u32 %s1510_s4, 4  ;;  %s1036_s28 = int_to_ptr.vmem [resolvable:$true] %s1035_s28 }
  0x7e   :  { %1213 = vmatprep.subr.bf16.mxu1 %v1349_v59  ;;  %p1477_p5 = scmp.lt.s32.totalorder %s1036_s28, %s1036_s28 }
  0x80   :  { %1192 = vmatpush3.bf16.msra.mxu0 %v1350_v60 }
  0x81   :  { %1214 = vmatpush3.bf16.msra.mxu1 %v1351_v61  ;;  %1193 = vmatprep.subr.bf16.mxu0 %v1352_v62 }
  0x82   :  { %1215 = vmatprep.subr.bf16.mxu1 %v1353_v63 }
  0x84   :  { %1194 = vmatpush3.bf16.msra.mxu0 %v1354_v0  ;;  %v1128_v0 = vld [vmem:[%s1653_s6] ss:$0 sm:$0xff]  ;;  %s1472_s6 = scalar_lea.vmem %s1036_s28, 128 }
  0x85   :  { %1216 = vmatpush3.bf16.msra.mxu1 %v1355_v1  ;;  %1195 = vmatprep.subr.bf16.mxu0 %v1356_v2  ;;  %p1473_p4 = scmp.ne.s32.totalorder %s1036_s28, %s1472_s6  ;;  %p1478_p6 = scmp.lt.s32.totalorder %s1472_s6, %s1472_s6 }
  0x86   :  { %1217 = vmatprep.subr.bf16.mxu1 %v1357_v3 }
  0x87   :  { %p1479_p7 = por %p1478_p6, %p1477_p5 }
  0x88   :  { %1196 = vmatpush3.bf16.msra.mxu0 %v1358_v4 }
  0x89   :  { %1218 = vmatpush3.bf16.msra.mxu1 %v1359_v5  ;;  %1243 = vmatprep.subr.bf16.mxu0 %v1508_v13  ;;  %p1480_p8 = pnand %p1479_p7, %p1473_p4 }
  0x8a   :  { %1263 = vmatprep.subr.bf16.mxu1 %v1508_v13 }
  0x8b   :  { %745 = vmatmul.mubr.bf16.vlgmr.msra.gmra.mrb[4].mxu0 %v1051_v7 }
  0x8c   :  { %785 = vmatmul.mubr.bf16.vlgmr.msra.gmra.mrb[4].mxu1 %v1053_v10  ;;  %1244 = vmatpush3.bf16.msra.mxu0 %v1364_v12 }
  0x8d   :  { %1245 = vmatprep.subr.bf16.mxu0 %v1508_v13  ;;  %1259 = vmatprep.mubr.msk.bf16.mxu0 %vm1509_vm0, %v1508_v13 }
  0x8e   :  { %1279 = vmatprep.mubr.msk.bf16.mxu1 %vm1509_vm0, %v1508_v13  ;;  %1264 = vmatpush3.bf16.msra.mxu1 %v1372_v21 }
  0x8f   :  { %1265 = vmatprep.subr.bf16.mxu1 %v1508_v13 }
  0x90   :  { %1246 = vmatpush3.bf16.msra.mxu0 %v1365_v14 }
  0x91   :  { %1247 = vmatprep.subr.bf16.mxu0 %v1508_v13 }
  0x92   :  { %1266 = vmatpush3.bf16.msra.mxu1 %v1373_v22 }
  0x93   :  { %1267 = vmatprep.subr.bf16.mxu1 %v1508_v13 }
  0x94   :  { %1248 = vmatpush3.bf16.msra.mxu0 %v1366_v15 }
  0x95   :  { %1249 = vmatprep.subr.bf16.mxu0 %v1508_v13 }
  0x96   :  { %1268 = vmatpush3.bf16.msra.mxu1 %v1374_v23 }
  0x97   :  { %1269 = vmatprep.subr.bf16.mxu1 %v1508_v13 }
  0x98   :  { %1250 = vmatpush3.bf16.msra.mxu0 %v1367_v16 }
  0x99   :  { %1251 = vmatprep.subr.bf16.mxu0 %v1508_v13 }
  0x9a   :  { %1270 = vmatpush3.bf16.msra.mxu1 %v1375_v24 }
  0x9b   :  { %1271 = vmatprep.subr.bf16.mxu1 %v1508_v13 }
  0x9c   :  { %1252 = vmatpush3.bf16.msra.mxu0 %v1368_v17 }
  0x9d   :  { %1253 = vmatprep.subr.bf16.mxu0 %v1508_v13 }
  0x9e   :  { %1272 = vmatpush3.bf16.msra.mxu1 %v1376_v25 }
  0x9f   :  { %1273 = vmatprep.subr.bf16.mxu1 %v1508_v13 }
  0xa0   :  { %1254 = vmatpush3.bf16.msra.mxu0 %v1369_v18 }
  0xa1   :  { %1255 = vmatprep.subr.bf16.mxu0 %v1508_v13 }
  0xa2   :  { %1274 = vmatpush3.bf16.msra.mxu1 %v1377_v26 }
  0xa3   :  { %1275 = vmatprep.subr.bf16.mxu1 %v1508_v13 }
  0xa4   :  { %1256 = vmatpush3.bf16.msra.mxu0 %v1370_v19 }
  0xa5   :  { %1257 = vmatprep.subr.bf16.mxu0 %v1508_v13 }
  0xa6   :  { %1276 = vmatpush3.bf16.msra.mxu1 %v1378_v54 }
  0xa7   :  { %1277 = vmatprep.subr.bf16.mxu1 %v1508_v13 }
  0xa8   :  { %1258 = vmatpush3.bf16.msra.mxu0 %v1371_v20 }
  0xaa   :  { %1278 = vmatpush3.bf16.msra.mxu1 %v1379_v55 }
 0x13e   :  { %v1153_v27 = vpop.f32.mrb[0].mxu0 }
 0x13f   :  { %v1175_v28 = vpop.f32.mrb[0].mxu1  ;;  %v1154_v30 = vpop.f32.mrb[1].mxu0 }
 0x140   :  { %v1176_v31 = vpop.f32.mrb[1].mxu1  ;;  %v1155_v32 = vadd.f32 %v1154_v30, %v1153_v27  ;;  %v1156_v34 = vpop.f32.mrb[2].mxu0 }
 0x141   :  { %v1177_v33 = vadd.f32 %v1176_v31, %v1175_v28  ;;  %v1178_v35 = vpop.f32.mrb[2].mxu1  ;;  %v1157_v36 = vpop.f32.mrb[3].mxu0 }
 0x142   :  { %v1179_v37 = vpop.f32.mrb[3].mxu1  ;;  %v667_v38 = vadd.f32 %v1155_v32, %v1046_v29 }
 0x144   :  { %v707_v39 = vadd.f32 %v1177_v33, %v667_v38 }
 0x15e   :  { %v1197_v40 = vpop.f32.mrb[4].mxu0 }
 0x15f   :  { %v1219_v41 = vpop.f32.mrb[4].mxu1  ;;  %v1198_v42 = vpop.f32.mrb[5].mxu0 }
 0x160   :  { %v1220_v43 = vpop.f32.mrb[5].mxu1  ;;  %v1199_v44 = vadd.f32 %v1198_v42, %v1197_v40  ;;  %v1200_v46 = vpop.f32.mrb[6].mxu0 }
 0x161   :  { %v1221_v45 = vadd.f32 %v1220_v43, %v1219_v41  ;;  %v1222_v47 = vpop.f32.mrb[6].mxu1  ;;  %v1201_v48 = vpop.f32.mrb[7].mxu0 }
 0x162   :  { %v1223_v49 = vpop.f32.mrb[7].mxu1  ;;  %v747_v50 = vadd.f32 %v1199_v44, %v707_v39 }
 0x164   :  { %v787_v51 = vadd.f32 %v1221_v45, %v747_v50 }
 0x166   :  { %v792_v52 = vmax.f32 %v787_v51, 0.0 }
 0x168   :  { %v793_v53 = vpack.c.bf16 %v792_v52, %v792_v52 }
 0x16a   :  { %1260 = vmatmul.mubr.bf16.vlgmr.msra.gmra.mrb[8].mxu0 %v793_v53 }
 0x23d   :  { %v899_v57 = vpop.f32.mrb[8].mxu0 }
 0x23e   :  { %v900_v58 = vadd.f32 %v1119_v56, %v899_v57  ;;  %v1261_v59 = vpop.f32.mrb[9].mxu0 }
 0x23f   :  { %v902_v60 = vpop.f32.mrb[10].mxu0 }
 0x240   :  { %v905_v61 = vmax.f32 %v900_v58, 0.0  ;;  %v1262_v62 = vpop.f32.mrb[11].mxu0 }
 0x242   :  { %v906_v63 = vpack.c.bf16 %v905_v61, %v905_v61 }
 0x244   :  { %1280 = vmatmul.mubr.bf16.vlgmr.msra.gmra.mrb[8].mxu1 %v906_v63 }
 0x317   :  { %v1012_v1 = vpop.f32.mrb[8].mxu1 }
 0x318   :  { %v1013_v2 = vadd.f32 %v1128_v0, %v1012_v1  ;;  %v1281_v3 = vpop.f32.mrb[9].mxu1 }
 0x319   :  { %v1015_v4 = vpop.f32.mrb[10].mxu1 }
 0x31a   :  { %1018 = vmax.xlane.f32.xlu0 %v1013_v2  ;;  %v1282_v5 = vpop.f32.mrb[11].mxu1 }
 0x3a7   :  { %v1019_v6 = vpop.xlane.xlu0 %1018 }
 0x3a8   :  { %v1020_v7 = vsub.f32 %v1013_v2, %v1019_v6 }
 0x3aa   :  { %v1021_v8 = vmul.f32 1.442695, %v1020_v7 }
 0x3ac   :  { %1380 = vpow2.f32 %v1021_v8 }
 0x3b6   :  { %v1381_v9 = vpop.eup %1380 }
 0x3b7   :  { %1023 = vadd.xlane.f32.xlu0 %v1381_v9 }
 0x444   :  { %v1024_v10 = vpop.xlane.xlu0 %1023 }
 0x445   :  { %1382 = vlog2.f32 %v1024_v10 }
 0x44f   :  { %v1383_v11 = vpop.eup %1382 }
 0x450   :  { %v1026_v12 = vmul.f32 0.6931472, %v1383_v11 }
 0x452   :  { %v1027_v13 = vsub.f32 %v1020_v7, %v1026_v12 }
 0x454   :  { %1028 = vst [vmem:[#allocation10] sm:$0xff] %v1027_v13 }
 0x455   :  { %1483 = shalt.err (!%p1480_p8)
}
 0x456   :  { %s1484_s8 = scalar_lea.hbm %s1654_s7, 128 }
 0x457   :  { %p1485_p9 = scmp.ne.s32.totalorder %s1654_s7, %s1484_s8  ;;  %p1488_p10 = scmp.lt.u32.totalorder %s1484_s8, %s1654_s7 }
 0x459   :  { %p1490_p11 = pnand %p1488_p10, %p1485_p9 }
 0x45b   :  { %1493 = shalt.err (!%p1490_p11)
}
 0x45c   :  { %1038 = dma.vmem_to_hbm [thread:$0]  %s1036_s28, 128, %s1654_s7, [#allocation4]  }
 0x45d   :  { %1500 = dma.done.wait [#allocation4], 128  }
 0x45e   :  { %1501 = vsyncadd [#allocation4], 4294967168 }
 0x45f   :  { %1042 = vsyncpa [#allocation3], 1 }
 0x460   :  { %1043 = vsyncpa [#allocation6], 1 }
 0x461   :  { %1044 = vsyncpa [#allocation9], 1 }
 0x462   :  { %1045 = vsyncpa [#allocation4], 1 }

</bundles_post_ra>
